<compile_context>
chip_gen: v7x
topology: tpu7x:2x2x1
jax: 0.10.0
libtpu: 0.0.40
codegen_flags: <defaults>
</compile_context>

<pallas_src>
import functools
import math

import jax
import jax.numpy as jnp
from jax.experimental import pallas as pl
from jax.experimental.pallas import tpu as pltpu

EPS = 1e-5                      # nn.GroupNorm default
SUBLANE = 8
VMEM_LIMIT = 32 * 1024 * 1024   # explicit, safe on v5e/v6e/v7x


def _round_up(x, m):
    return (x + m - 1) // m * m


def _fused_kernel(x_ref, w1_ref, b1_ref, w2_ref, b2_ref, o_ref, *, mxu_dtype):
    """relu(x @ W1'_b + b1'_b) @ W2 + b2 for one (batch, N-tile)."""
    x = x_ref[...].astype(jnp.float32)

    # Conv1d(dim, F, k=1) with the GroupNorm affine pre-folded into the
    # per-batch weights.  K = dim (3/6): the MXU is ~2% utilized but this
    # kernel is output-write bound, so the matmul is effectively free.
    h = jnp.dot(x, w1_ref[...], preferred_element_type=jnp.float32,
                precision=jax.lax.Precision.HIGHEST)
    hn = jnp.maximum(h + b1_ref[...], 0.0)

    # Conv1d(F, F, k=1) on the MXU.
    strict = jnp.dtype(mxu_dtype) == jnp.dtype(jnp.float32)
    prec = jax.lax.Precision.HIGHEST if strict else jax.lax.Precision.DEFAULT
    out = jnp.dot(hn.astype(mxu_dtype), w2_ref[...],
                  preferred_element_type=jnp.float32, precision=prec)
    o_ref[...] = (out + b2_ref[...]).astype(o_ref.dtype)


def _forward_3d(x, params, *, tile_n, mxu_dtype):
    B, N, dim = x.shape
    w1, b1, gamma, beta, w2, b2 = params
    F = w1.shape[1]
    hp = jax.lax.Precision.HIGHEST

    # ---- Analytic GroupNorm(1, F) statistics from dim-sized x moments ----
    x32 = x.astype(jnp.float32)
    sx = jnp.sum(x32, axis=1)                                    # (B, dim)
    xx = jnp.einsum('bnd,bne->bde', x32, x32, precision=hp)      # (B, dim, dim)
    sxw = jnp.einsum('bd,df->bf', sx, w1, precision=hp)          # (B, F)
    gram = jnp.einsum('df,ef->de', w1, w1, precision=hp)         # (dim, dim)

    total = jnp.sum(sxw, axis=-1) + float(N) * jnp.sum(b1)       # Sum_{n,f} h
    total_sq = (jnp.einsum('bde,de->b', xx, gram, precision=hp)
                + 2.0 * jnp.einsum('bf,f->b', sxw, b1, precision=hp)
                + float(N) * jnp.sum(b1 * b1))                   # Sum_{n,f} h^2

    cnt = float(N * F)
    mean = total / cnt
    # TODO(synk): E[h^2]-E[h]^2 can lose precision when |mean| >> std(h); for
    # that regime a centered / Welford-style combine would be needed.
    var = jnp.maximum(total_sq / cnt - mean * mean, 0.0)
    rstd = jax.lax.rsqrt(var + EPS)                              # (B,)

    # ---- Fold GroupNorm affine into per-batch conv1 weights ----
    scale = gamma[None, :] * rstd[:, None]                       # (B, F)
    shift = beta[None, :] - mean[:, None] * scale                # (B, F)
    w1f = w1[None, :, :] * scale[:, None, :]                     # (B, dim, F)
    b1f = (b1[None, :] * scale + shift)[:, None, :]              # (B, 1, F)

    w2c = w2.astype(mxu_dtype)                                   # (F, F)
    b2c = b2.reshape(1, F).astype(jnp.float32)                   # (1, F)

    # ---- N tiling: pad only the tiny input; output stays exactly (B, N, F)
    tile_n = max(SUBLANE, min(tile_n, _round_up(N, SUBLANE)))
    tile_n = _round_up(tile_n, SUBLANE)
    num_tiles = (N + tile_n - 1) // tile_n
    n_pad = num_tiles * tile_n
    xp = x if n_pad == N else jnp.pad(x, ((0, 0), (0, n_pad - N), (0, 0)))

    out = pl.pallas_call(
        functools.partial(_fused_kernel, mxu_dtype=mxu_dtype),
        out_shape=jax.ShapeDtypeStruct((B, N, F), x.dtype),
        grid_spec=pltpu.PrefetchScalarGridSpec(
            num_scalar_prefetch=0,
            grid=(B, num_tiles),
            in_specs=[
                pl.BlockSpec((None, tile_n, dim), lambda b, n: (b, n, 0)),  # x
                pl.BlockSpec((None, dim, F), lambda b, n: (b, 0, 0)),       # W1'_b
                pl.BlockSpec((None, 1, F), lambda b, n: (b, 0, 0)),         # b1'_b
                pl.BlockSpec((F, F), lambda b, n: (0, 0)),                  # W2 (resident)
                pl.BlockSpec((1, F), lambda b, n: (0, 0)),                  # b2 (resident)
            ],
            out_specs=pl.BlockSpec((None, tile_n, F), lambda b, n: (b, n, 0)),
        ),
        compiler_params=pltpu.CompilerParams(
            dimension_semantics=("parallel", "parallel"),   # both TCs busy on v7x
            vmem_limit_bytes=VMEM_LIMIT),
    )(xp, w1f, b1f, w2c, b2c)
    return out


def position_embedding_learned(x, params, *, tile_n=1024,
                               mxu_dtype=jnp.bfloat16):
    """x: (B, N, dim) or (B, V, H, W, dim) -> (B, N, F) or (B, V, H, W, F)."""
    if x.ndim == 5:
        B, V, H, W, C = x.shape
        out = _forward_3d(x.reshape(B, V * H * W, C), params,
                          tile_n=tile_n, mxu_dtype=mxu_dtype)
        return out.reshape(B, V, H, W, -1)
    if x.ndim == 3:
        return _forward_3d(x, params, tile_n=tile_n, mxu_dtype=mxu_dtype)
    raise ValueError("xyz should be 3 or 5 dimensional")


def init_params(key, dim, num_pos_feats):
    """xavier_uniform matrices (like _reset_parameters), small-uniform conv
    biases, GroupNorm affine = ones/zeros.  Conv weights stored as (in, out)."""
    k1, k2, k3, k4 = jax.random.split(key, 4)

    def xavier(k, fan_in, fan_out, shape):
        a = math.sqrt(6.0 / (fan_in + fan_out))
        return jax.random.uniform(k, shape, jnp.float32, -a, a)

    w1 = xavier(k1, dim, num_pos_feats, (dim, num_pos_feats))
    b1 = jax.random.uniform(k2, (num_pos_feats,), jnp.float32,
                            -1.0 / math.sqrt(dim), 1.0 / math.sqrt(dim))
    gamma = jnp.ones((num_pos_feats,), jnp.float32)
    beta = jnp.zeros((num_pos_feats,), jnp.float32)
    w2 = xavier(k3, num_pos_feats, num_pos_feats,
                (num_pos_feats, num_pos_feats))
    b2 = jax.random.uniform(k4, (num_pos_feats,), jnp.float32,
                            -1.0 / math.sqrt(num_pos_feats),
                            1.0 / math.sqrt(num_pos_feats))
    return (w1, b1, gamma, beta, w2, b2)


def reference(x, params):
    """Pure-JAX reference mirroring the PyTorch forward (channels-last, f32)."""
    w1, b1, gamma, beta, w2, b2 = params
    hp = jax.lax.Precision.HIGHEST
    h = jnp.einsum("bnd,df->bnf", x, w1, precision=hp) + b1      # Conv1d k=1
    mean = jnp.mean(h, axis=(1, 2), keepdims=True)               # GroupNorm(1, F)
    var = jnp.mean((h - mean) ** 2, axis=(1, 2), keepdims=True)
    hn = (h - mean) / jnp.sqrt(var + EPS) * gamma + beta
    hn = jnp.maximum(hn, 0.0)                                    # ReLU
    return jnp.einsum("bnf,fg->bng", hn, w2, precision=hp) + b2  # Conv1d k=1


if __name__ == "__main__":
    key = jax.random.PRNGKey(0)
    kx, kp, kx2, kp2, kx3 = jax.random.split(key, 5)

    # ---- Config A: tiny 3-D input ----
    B, N, DIM, F = 2, 16, 3, 32
    x = jax.random.normal(kx, (B, N, DIM), jnp.float32)
    params = init_params(kp, DIM, F)
    ref = reference(x, params)

    out_f32 = jax.block_until_ready(
        position_embedding_learned(x, params, mxu_dtype=jnp.float32))
    assert out_f32.shape == (B, N, F)
    assert jnp.allclose(out_f32, ref, atol=1e-3, rtol=1e-3), "f32 mismatch"

    out_bf16 = jax.block_until_ready(
        position_embedding_learned(x, params))          # bf16 MXU default
    assert jnp.allclose(out_bf16, ref, atol=5e-2, rtol=5e-2), "bf16 mismatch"

    # ---- Config B: N tiling + edge tile + module-default F (not a 128 mult) ----
    B2, N2, F2 = 2, 1000, 288
    x2 = jax.random.normal(kx2, (B2, N2, DIM), jnp.float32)
    params2 = init_params(kp2, DIM, F2)
    ref2 = reference(x2, params2)
    out2 = jax.block_until_ready(
        position_embedding_learned(x2, params2, tile_n=256,
                                   mxu_dtype=jnp.float32))
    assert out2.shape == (B2, N2, F2)
    assert jnp.allclose(out2, ref2, atol=1e-3, rtol=1e-3), "tiled mismatch"

    # ---- Config C: 5-D input path ----
    B3, V3, H3, W3 = 2, 2, 4, 4
    x3 = jax.random.normal(kx3, (B3, V3, H3, W3, DIM), jnp.float32)
    ref3 = reference(x3.reshape(B3, V3 * H3 * W3, DIM),
                     params).reshape(B3, V3, H3, W3, F)
    out3 = jax.block_until_ready(
        position_embedding_learned(x3, params, mxu_dtype=jnp.float32))
    assert out3.shape == (B3, V3, H3, W3, F)
    assert jnp.allclose(out3, ref3, atol=1e-3, rtol=1e-3), "5d mismatch"

    print("KERNEL_OK")
</pallas_src>

<mosaic_0001>
module attributes {stable_mosaic.version = 11 : i64} {
  func.func @_fused_kernel(%arg0: i32, %arg1: i32, %arg2: memref<1x16x3xf32, #tpu.memory_space<vmem>>, %arg3: memref<1x3x32xf32, #tpu.memory_space<vmem>>, %arg4: memref<1x1x32xf32, #tpu.memory_space<vmem>>, %arg5: memref<32x32xf32, #tpu.memory_space<vmem>>, %arg6: memref<1x32xf32, #tpu.memory_space<vmem>>, %arg7: memref<1x16x32xf32, #tpu.memory_space<vmem>>) attributes {dimension_semantics = [#tpu.dimension_semantics<parallel>, #tpu.dimension_semantics<parallel>], iteration_bounds = array<i64: 2, 1>, scalar_prefetch = 0 : i64, scratch_operands = 0 : i64, tpu.core_type = #tpu.core_type<tc>, window_params = [{transform_indices = @transform_0, window_bounds = array<i64: 1, 16, 3>}, {transform_indices = @transform_1, window_bounds = array<i64: 1, 3, 32>}, {transform_indices = @transform_2, window_bounds = array<i64: 1, 1, 32>}, {pipeline_mode = #tpu.pipeline_mode<synchronous>, transform_indices = @transform_3, window_bounds = array<i64: 32, 32>}, {pipeline_mode = #tpu.pipeline_mode<synchronous>, transform_indices = @transform_4, window_bounds = array<i64: 1, 32>}, {transform_indices = @transform_5, window_bounds = array<i64: 1, 16, 32>}]} {
    %c0 = arith.constant 0 : index
    %c0_0 = arith.constant 0 : index
    %c0_1 = arith.constant 0 : index
    %0 = vector.load %arg2[%c0, %c0_0, %c0_1] : memref<1x16x3xf32, #tpu.memory_space<vmem>>, vector<1x16x3xf32>
    %1 = vector.shape_cast %0 : vector<1x16x3xf32> to vector<16x3xf32>
    %c0_2 = arith.constant 0 : index
    %c0_3 = arith.constant 0 : index
    %c0_4 = arith.constant 0 : index
    %2 = vector.load %arg3[%c0_2, %c0_3, %c0_4] : memref<1x3x32xf32, #tpu.memory_space<vmem>>, vector<1x3x32xf32>
    %3 = vector.shape_cast %2 : vector<1x3x32xf32> to vector<3x32xf32>
    %cst = arith.constant dense<0.000000e+00> : vector<16x32xf32>
    %4 = tpu.matmul %1, %3, %cst {dimension_numbers = #tpu.dot_dimension_numbers<[1], [0], [0], [1], [0, 0, 1, 1], [], []>, precision = #tpu.contract_precision<fp32>} : vector<16x3xf32>, vector<3x32xf32>, vector<16x32xf32> -> vector<16x32xf32>
    %c0_5 = arith.constant 0 : index
    %c0_6 = arith.constant 0 : index
    %c0_7 = arith.constant 0 : index
    %5 = vector.load %arg4[%c0_5, %c0_6, %c0_7] : memref<1x1x32xf32, #tpu.memory_space<vmem>>, vector<1x1x32xf32>
    %6 = vector.shape_cast %5 : vector<1x1x32xf32> to vector<1x32xf32>
    %7 = vector.broadcast %6 : vector<1x32xf32> to vector<16x32xf32>
    %8 = arith.addf %4, %7 : vector<16x32xf32>
    %cst_8 = arith.constant 0.000000e+00 : f32
    %9 = vector.broadcast %cst_8 : f32 to vector<16x32xf32>
    %10 = arith.maximumf %8, %9 : vector<16x32xf32>
    %c0_9 = arith.constant 0 : index
    %c0_10 = arith.constant 0 : index
    %11 = vector.load %arg5[%c0_9, %c0_10] : memref<32x32xf32, #tpu.memory_space<vmem>>, vector<32x32xf32>
    %cst_11 = arith.constant dense<0.000000e+00> : vector<16x32xf32>
    %12 = tpu.matmul %10, %11, %cst_11 {dimension_numbers = #tpu.dot_dimension_numbers<[1], [0], [0], [1], [0, 0, 1, 1], [], []>, precision = #tpu.contract_precision<fp32>} : vector<16x32xf32>, vector<32x32xf32>, vector<16x32xf32> -> vector<16x32xf32>
    %c0_12 = arith.constant 0 : index
    %c0_13 = arith.constant 0 : index
    %13 = vector.load %arg6[%c0_12, %c0_13] : memref<1x32xf32, #tpu.memory_space<vmem>>, vector<1x32xf32>
    %14 = vector.broadcast %13 : vector<1x32xf32> to vector<16x32xf32>
    %15 = arith.addf %12, %14 : vector<16x32xf32>
    %c0_14 = arith.constant 0 : index
    %c0_15 = arith.constant 0 : index
    %c0_16 = arith.constant 0 : index
    %16 = vector.load %arg7[%c0_14, %c0_15, %c0_16] : memref<1x16x32xf32, #tpu.memory_space<vmem>>, vector<1x16x32xf32>
    %17 = vector.shape_cast %16 : vector<1x16x32xf32> to vector<16x32xf32>
    %18 = vector.shape_cast %15 : vector<16x32xf32> to vector<1x16x32xf32>
    tpu.vector_store %arg7[%c0_14, %c0_15, %c0_16], %18 {strides = array<i32>} : memref<1x16x32xf32, #tpu.memory_space<vmem>>, vector<1x16x32xf32>,
    return
  }
  func.func @transform_0(%arg0: i32, %arg1: i32) -> (i32, i32, i32) {
    %c0_i32 = arith.constant 0 : i32
    %c0_i32_0 = arith.constant 0 : i32
    return %arg0, %arg1, %c0_i32 : i32, i32, i32
  }
  func.func @transform_1(%arg0: i32, %arg1: i32) -> (i32, i32, i32) {
    %c0_i32 = arith.constant 0 : i32
    %c0_i32_0 = arith.constant 0 : i32
    %c0_i32_1 = arith.constant 0 : i32
    return %arg0, %c0_i32, %c0_i32_0 : i32, i32, i32
  }
  func.func @transform_2(%arg0: i32, %arg1: i32) -> (i32, i32, i32) {
    %c0_i32 = arith.constant 0 : i32
    %c0_i32_0 = arith.constant 0 : i32
    %c0_i32_1 = arith.constant 0 : i32
    return %arg0, %c0_i32, %c0_i32_0 : i32, i32, i32
  }
  func.func @transform_3(%arg0: i32, %arg1: i32) -> (i32, i32) {
    %c0_i32 = arith.constant 0 : i32
    %c0_i32_0 = arith.constant 0 : i32
    %c0_i32_1 = arith.constant 0 : i32
    return %c0_i32, %c0_i32_0 : i32, i32
  }
  func.func @transform_4(%arg0: i32, %arg1: i32) -> (i32, i32) {
    %c0_i32 = arith.constant 0 : i32
    %c0_i32_0 = arith.constant 0 : i32
    %c0_i32_1 = arith.constant 0 : i32
    return %c0_i32, %c0_i32_0 : i32, i32
  }
  func.func @transform_5(%arg0: i32, %arg1: i32) -> (i32, i32, i32) {
    %c0_i32 = arith.constant 0 : i32
    %c0_i32_0 = arith.constant 0 : i32
    return %arg0, %arg1, %c0_i32 : i32, i32, i32
  }
}

</mosaic_0001>

<bundles_post_ra>
// kernel: tpu_custom_call.1
= control target key start
LH: loop header
LB: loop body
LE: loop exit
PB: predicated region body
PF: predicated region fallthrough
CT: control target
= control target key end

     0   :  { %10 = vsyncpa [#allocation3], 0  ;;  %s2032_s0 = inlined_call_operand.vmem [shape: f32[2,16,3], index: 0, kind: input, shape index: {}]   ;;  %s2033_s1 = inlined_call_operand.vmem [shape: f32[2,3,32], index: 1, kind: input, shape index: {}]   ;;  %s2034_s2 = inlined_call_operand.vmem [shape: f32[2,1,32], index: 2, kind: input, shape index: {}]   ;;  %s2035_s3 = inlined_call_operand.vmem [shape: f32[32,32], index: 3, kind: input, shape index: {}]   ;;  %s2036_s4 = inlined_call_operand.vmem [shape: f32[1,32], index: 4, kind: input, shape index: {}]   ;;  %s2037_s5 = inlined_call_operand.hbm [shape: f32[2,16,32], index: 5, kind: output, shape index: {}]  }
   0x1   :  { %12 = vsyncpa [#allocation3 + $0x1], 0  ;;  %s1871_s18 = smov 0   ;;  %s1873_s19 = smov 0  }
   0x2   :  { %s1875_s20 = smov 0   ;;  %s1877_s21 = smov 0  }
   0x3   :  { %s1879_s22 = smov 0   ;;  %s1881_s23 = smov 0  }
   0x4 LB: > { %s1461_s24 = sadd.s32 4294967295, %s1836_s23   ;;  %s1462_s25 = sadd.s32 4294967294, %s1836_s23   ;;  %s1836_s23 = sphi %s1881_s23, %s18_s23   ;;  %s1832_s22 = sphi %s1879_s22, %s2044_s22   ;;  %s1828_s21 = sphi %s1877_s21, %s2043_s21   ;;  %s1824_s20 = sphi %s1875_s20, %s2042_s20   ;;  %s1820_s19 = sphi %s1873_s19, %s2041_s19   ;;  %s1816_s18 = sphi %s1871_s18, %s2040_s18  }
   0x5   : > { %s30_s26 = sadd.s32 1, %s1832_s22  ;;  %s161_s27 = sadd.s32 1, %s1824_s20 }
   0x6   : > { %p32_p0 = scmp.ge.s32.totalorder %s30_s26, 2  ;;  %p171_p1 = scmp.ne.s32.totalorder %s1824_s20, %s1820_s19 }
   0x7   : > { %p172_p2 = scmp.eq.s32.totalorder %s1461_s24, 1  ;;  %p177_p3 = scmp.ne.s32.totalorder %s1820_s19, %s1816_s18 }
   0x8   : > { %s2046_s26 = smov (%p32_p0, %s30_s26), 0  ;;  %p178_p5 = scmp.eq.s32.totalorder %s1462_s25, 1 }
   0x9   : > { %p1911_p4 = por %p172_p2, %p171_p1  ;;  %s156_s29 = ssub.s32 %s1832_s22, %s2046_s26 }
   0xa   : > { %p1465_p6 = scmp.ge.s32.totalorder %s1836_s23, 1  ;;  %p159_p7 = scmp.eq.s32.totalorder %s156_s29, 0 }
   0xb   : > { %p1918_p8 = por %p178_p5, %p177_p3  ;;  %p228_p9 = scmp.lt.s32.totalorder %s1836_s23, 3 }
   0xc   : > { %s1924_s6 = scalar_select %p159_p7, %s1824_s20, %s161_s27  }
   0xd   : > { %p229_p10 = pnand %p1465_p6, %p228_p9 }
   0xe   : > { %p268_p11 = scmp.lt.s32.totalorder (!%p229_p10), %s1828_s21, 1  ;;  %vm302_vm0 = vcmask (!%p229_p10), 1042432   ;;  %vm295_vm1 = vcmask (!%p229_p10), 23552   ;;  %v797_v21 = vld [vmem:[%s2035_s3] sm:$0xff] (!%p229_p10)  ;;  %v798_v22 = vld [vmem:[%s2035_s3 + $0x8] sm:$0xff] (!%p229_p10)  ;;  %v799_v27 = vld [vmem:[%s2035_s3 + $0x10] sm:$0xff] (!%p229_p10) }
   0xf   : > { %232 = sbr.rel (%p229_p10) target bundleno = 549 (0x225), region = 40  ;;  %v816_v23 = vand.u32 (!%p229_p10), 4294901760, %v797_v21  ;;  %v819_v24 = vand.u32 (!%p229_p10), 4294901760, %v798_v22  ;;  %v800_v28 = vld [vmem:[%s2035_s3 + $0x18] sm:$0xff] (!%p229_p10)  ;;  %v822_v30 = vand.u32 (!%p229_p10), 4294901760, %v799_v27  ;;  %vm808_vm2 = vcmask (!%p229_p10), 261120  }
  0x10   : > { %v825_v31 = vand.u32 (!%p229_p10), 4294901760, %v800_v28  ;;  %s1478_s24 = sshll.u32 (!%p229_p10), %s1828_s21, 8 }
  0x11   : > { %v906_v25 = vsub.f32 (!%p229_p10), %v797_v21, %v816_v23  ;;  %v913_v26 = vsub.f32 (!%p229_p10), %v798_v22, %v819_v24  ;;  %v920_v32 = vsub.f32 (!%p229_p10), %v799_v27, %v822_v30  ;;  %v1950_v35 = vpack.c.bf16 (!%p229_p10), %v819_v24, %v816_v23  ;;  %s1982_s29 = scalar_lea.hbm (!%p229_p10), %s2037_s5, %s1478_s24 }
  0x12   : > { %v927_v33 = vsub.f32 (!%p229_p10), %v800_v28, %v825_v31  ;;  %v1952_v36 = vpack.c.bf16 (!%p229_p10), %v825_v31, %v822_v30 }
  0x13   : > { %v1645_v29 = vpack.c.bf16 (!%p229_p10), %v913_v26, %v906_v25  ;;  %v907_v37 = vand.u32 (!%p229_p10), 4294901760, %v906_v25  ;;  %v914_v38 = vand.u32 (!%p229_p10), 4294901760, %v913_v26  ;;  %v921_v43 = vand.u32 (!%p229_p10), 4294901760, %v920_v32 }
  0x14   : > { %v1649_v34 = vpack.c.bf16 (!%p229_p10), %v927_v33, %v920_v32  ;;  %v928_v44 = vand.u32 (!%p229_p10), 4294901760, %v927_v33 }
  0x15   : > { %v908_v39 = vsub.f32 (!%p229_p10), %v906_v25, %v907_v37  ;;  %v915_v40 = vsub.f32 (!%p229_p10), %v913_v26, %v914_v38  ;;  %v922_v46 = vsub.f32 (!%p229_p10), %v920_v32, %v921_v43  ;;  %v1661_v48 = vpack.c.bf16 (!%p229_p10), %v914_v38, %v907_v37 }
  0x16   : > { %s1928_s7 = scalar_select %p268_p11, %s1828_s21, 1  ;;  %v929_v47 = vsub.f32 %v927_v33, %v928_v44  ;;  %v1665_v52 = vpack.c.bf16 %v928_v44, %v921_v43 }
  0x17   : > { %v909_v41 = vand.u32 4294901760, %v908_v39  ;;  %v916_v42 = vand.u32 4294901760, %v915_v40  ;;  %v923_v49 = vand.u32 4294901760, %v922_v46 }
  0x18   : > { %s1469_s8 = sshll.u32 %s1928_s7, 2  ;;  %s1477_s9 = sshll.u32 %s1928_s7, 4  ;;  %v930_v50 = vand.u32 4294901760, %v929_v47 }
  0x19   : > { %s280_s12 = scalar_lea.vmem %s2033_s1, %s1469_s8  ;;  %s275_s15 = scalar_lea.vmem %s2032_s0, %s1477_s9  ;;  %v1637_v45 = vpack.c.bf16 %v916_v42, %v909_v41 }
  0x1a   : > { %v287_v0 = vld [vmem:[%s280_s12] sm:$0x7]  ;;  %v286_v2 = vld [vmem:[%s275_s15 + $0x8] sm:$0xff]  ;;  %v1641_v51 = vpack.c.bf16 %v930_v50, %v923_v49  ;;  %s283_s12 = scalar_lea.vmem %s2034_s2, %s1928_s7  ;;  %s264_s7 = sand.u32 1, %s1820_s19  }
  0x1b   : > { %v285_v1 = vld [vmem:[%s275_s15] sm:$0xff]  ;;  %v304_v3 = vsel %vm302_vm0, %v287_v0, 0  ;;  %v300_v5 = vsel %vm295_vm1, %v286_v2, 0  ;;  %s1466_s13 = sshll.u32 %s264_s7, 4  ;;  %s1986_s21 = scalar_lea.sflag [#allocation3], %s264_s7 }
  0x1c   : > { %v297_v4 = vsel %vm295_vm1, %v285_v1, 0  ;;  %v307_v6 = vand.u32 4294901760, %v304_v3  ;;  %v382_v8 = vand.u32 4294901760, %v300_v5  ;;  %v1470_v53 = vld [vmem:[%s283_s12] ss:$0 sm:$0xff]  ;;  %s266_s16 = scalar_lea.vmem [#allocation2], %s1466_s13 }
  0x1d   : > { %v372_v7 = vand.u32 4294901760, %v297_v4  ;;  %s1361_s17 = sshll.u32 %s266_s16, 4  ;;  %s1838_s9 = smov [#allocation2]   ;;  %s1977_s17 = int_to_ptr.vmem [resolvable:$true] %s1361_s17 }
  0x1e   : > { %v394_v9 = vsub.f32 %v304_v3, %v307_v6  ;;  %v383_v11 = vsub.f32 %v300_v5, %v382_v8  ;;  %1533 = vmatprep.subr.mxu1 %v307_v6  ;;  %s1758_s8 = scalar_lea.vmem %s1977_s17, 256  ;;  %s1762_s10 = sshll.u32 %s1838_s9, 4  ;;  %s1763_s10 = int_to_ptr.vmem [resolvable:$false] %s1762_s10 }
  0x1f   : > { %1540 = vmatprep.mubr.f32.mxu0 %v372_v7  ;;  %v373_v10 = vsub.f32 %v297_v4, %v372_v7  ;;  %1534 = vmatpush3.msra.mxu1 %v307_v6  ;;  %p1759_p12 = scmp.ne.s32.totalorder %s1977_s17, %s1758_s8  ;;  %s1764_s11 = scalar_lea.vmem %s1763_s10, 512 }
  0x20   : > { %v395_v12 = vand.u32 4294901760, %v394_v9  ;;  %v384_v14 = vand.u32 4294901760, %v383_v11  ;;  %1646 = vmatprep.subr.bf16.mxu1 %v1645_v29  ;;  %p1765_p1 = scmp.lt.s32.totalorder %s1977_s17, %s1763_s10  ;;  %p1766_p2 = scmp.lt.s32.totalorder %s1764_s11, %s1758_s8 }
  0x21   : > { %v374_v13 = vand.u32 4294901760, %v373_v10  ;;  %p1760_p13 = pnand %p1759_p12, %p1911_p4 }
  0x22   : > { %v396_v15 = vsub.f32 %v394_v9, %v395_v12  ;;  %v385_v17 = vsub.f32 %v383_v11, %v384_v14  ;;  %p1767_p3 = por %p1766_p2, %p1765_p1 }
  0x23   : > { %v375_v16 = vsub.f32 %v373_v10, %v374_v13  ;;  %p1761_p0 = pneg %p1760_p13 }
  0x24   : > { %v397_v18 = vand.u32 4294901760, %v396_v15  ;;  %v386_v20 = vand.u32 4294901760, %v385_v17 }
  0x25   : > { %v376_v19 = vand.u32 4294901760, %v375_v16  ;;  %p1768_p5 = pnand %p1767_p3, %p1761_p0 }
  0x26   : > { %1538 = vmatprep.subr.mxu0 %v397_v18 }
  0x27   : > { %1535 = vmatprep.mubr.f32.mxu1 %v376_v19  ;;  %1539 = vmatpush3.msra.mxu0 %v397_v18 }
  0x28   : > { %1536 = vmatmul.mubr.f32.vlgmr.msra.gmra.mrb[0].mxu1 %v386_v20  ;;  %1541 = vmatmul.mubr.f32.vlgmr.msra.gmra.mrb[0].mxu0 %v382_v8 }
  0x29   : > { %1543 = vmatprep.subr.mxu0 %v394_v9  ;;  %1545 = vmatprep.mubr.f32.mxu0 %v373_v10 }
  0x2a   : > { %1544 = vmatpush3.msra.mxu0 %v394_v9  ;;  %1648 = vmatpush3.bf16.msra.mxu1 %v1645_v29 }
  0x2b   : > { %1548 = vmatprep.subr.mxu0 %v307_v6  ;;  %1650 = vmatprep.subr.bf16.mxu1 %v1649_v34 }
  0x2e   : > { %1652 = vmatpush3.bf16.msra.mxu1 %v1649_v34 }
  0x2f   : > { %1654 = vmatprep.subr.bf16.mxu1 %v1950_v35 }
  0x30   : > { %1546 = vmatmul.mubr.f32.vlgmr.msra.gmra.mrb[0].mxu0 %v383_v11 }
  0x31   : > { %1549 = vmatpush3.msra.mxu0 %v307_v6  ;;  %1550 = vmatprep.mubr.f32.mxu0 %v374_v13 }
  0x32   : > { %1553 = vmatprep.subr.mxu0 %v395_v12 }
  0x38   : > { %1551 = vmatmul.mubr.f32.vlgmr.msra.gmra.mrb[0].mxu0 %v384_v14  ;;  %v1471_v14 = vld [vmem:[%s2036_s4] ss:$0 sm:$0xff] }
  0x39   : > { %1554 = vmatpush3.msra.mxu0 %v395_v12  ;;  %1555 = vmatprep.mubr.f32.mxu0 %v372_v7 }
  0x3a   : > { %1558 = vmatprep.subr.mxu0 %v307_v6 }
  0x40   : > { %1556 = vmatmul.mubr.f32.vlgmr.msra.gmra.mrb[0].mxu0 %v382_v8 }
  0x41   : > { %1559 = vmatpush3.msra.mxu0 %v307_v6  ;;  %1560 = vmatprep.mubr.f32.mxu0 %v372_v7 }
  0x42   : > { %1630 = vmatprep.subr.bf16.mxu0 %v1950_v35 }
  0x48   : > { %1561 = vmatmul.mubr.f32.vlgmr.msra.gmra.mrb[0].mxu0 %v382_v8 }
  0x49   : > { %1632 = vmatpush3.bf16.msra.mxu0 %v1950_v35 }
  0x4a   : > { %1634 = vmatprep.subr.bf16.mxu0 %v1952_v36 }
  0x4d   : > { %1636 = vmatpush3.bf16.msra.mxu0 %v1952_v36 }
  0x4e   : > { %1638 = vmatprep.subr.bf16.mxu0 %v1637_v45 }
  0xfb   : > { %v1537_v54 = vpop.f32.mrb[0].mxu1 }
  0xfc   : > { %v389_v55 = vadd.f32 %v1537_v54, %v1470_v53  ;;  %v378_v56 = vpop.f32.mrb[1].mxu1 }
  0xfd   : > { %v379_v57 = vadd.f32 %v1470_v53, %v378_v56 }
 0x11b   : > { %v1562_v58 = vpop.f32.mrb[0].mxu0 }
 0x11c   : > { %v1678_v59 = vadd.f32 %v1562_v58, %v389_v55  ;;  %v785_v60 = vpop.f32.mrb[1].mxu0 }
 0x11d   : > { %v1680_v61 = vadd.f32 %v785_v60, %v379_v57 }
 0x11e   : > { %v796_v62 = vmax.f32 %v1678_v59, 0.0 }
 0x11f   : > { %v795_v63 = vmax.f32 %v1680_v61, 0.0 }
 0x120   : > { %v813_v0 = vsel %vm808_vm2, %v796_v62, 0 }
 0x121   : > { %v894_v1 = vand.u32 4294901760, %v813_v0  ;;  %v810_v2 = vsel %vm808_vm2, %v795_v63, 0 }
 0x122   : > { %v884_v3 = vand.u32 4294901760, %v810_v2 }
 0x123   : > { %v895_v4 = vsub.f32 %v813_v0, %v894_v1 }
 0x124   : > { %v885_v5 = vsub.f32 %v810_v2, %v884_v3 }
 0x125   : > { %v896_v6 = vand.u32 4294901760, %v895_v4 }
 0x126   : > { %1593 = vmatprep.mubr.f32.mxu1 %v885_v5  ;;  %v886_v7 = vand.u32 4294901760, %v885_v5 }
 0x127   : > { %1594 = vmatmul.mubr.f32.vlgmr.msra.gmra.mrb[2].mxu1 %v895_v4  ;;  %v897_v8 = vsub.f32 %v895_v4, %v896_v6 }
 0x128   : > { %1656 = vmatpush3.bf16.msra.mxu1 %v1950_v35  ;;  %1604 = vmatprep.mubr.f32.mxu1 %v886_v7  ;;  %v887_v9 = vsub.f32 %v885_v5, %v886_v7 }
 0x129   : > { %1658 = vmatprep.subr.bf16.mxu1 %v1952_v36  ;;  %v898_v11 = vand.u32 4294901760, %v897_v8 }
 0x12a   : > { %v888_v10 = vand.u32 4294901760, %v887_v9 }
 0x12c   : > { %1571 = vmatprep.mubr.f32.mxu0 %v888_v10  ;;  %1660 = vmatpush3.bf16.msra.mxu1 %v1952_v36 }
 0x12d   : > { %1572 = vmatmul.mubr.f32.vlgmr.msra.gmra.mrb[2].mxu0 %v898_v11  ;;  %1662 = vmatprep.subr.bf16.mxu1 %v1661_v48 }
 0x12e   : > { %1640 = vmatpush3.bf16.msra.mxu0 %v1637_v45  ;;  %1582 = vmatprep.mubr.f32.mxu0 %v884_v3 }
 0x12f   : > { %1605 = vmatmul.mubr.f32.vlgmr.msra.gmra.mrb[2].mxu1 %v896_v6  ;;  %1642 = vmatprep.subr.bf16.mxu0 %v1641_v51 }
 0x130   : > { %1664 = vmatpush3.bf16.msra.mxu1 %v1661_v48  ;;  %1615 = vmatprep.mubr.f32.mxu1 %v884_v3 }
 0x131   : > { %1666 = vmatprep.subr.bf16.mxu1 %v1665_v52 }
 0x132   : > { %1644 = vmatpush3.bf16.msra.mxu0 %v1641_v51 }
 0x134   : > { %1668 = vmatpush3.bf16.msra.mxu1 %v1665_v52 }
 0x135   : > { %1583 = vmatmul.mubr.f32.vlgmr.msra.gmra.mrb[2].mxu0 %v894_v1  ;;  %1670 = vmatprep.subr.bf16.mxu1 %v1950_v35 }
 0x137   : > { %1616 = vmatmul.mubr.f32.vlgmr.msra.gmra.mrb[2].mxu1 %v894_v1 }
 0x138   : > { %1672 = vmatpush3.bf16.msra.mxu1 %v1950_v35  ;;  %1626 = vmatprep.mubr.f32.mxu1 %v884_v3 }
 0x139   : > { %1674 = vmatprep.subr.bf16.mxu1 %v1952_v36 }
 0x13c   : > { %1676 = vmatpush3.bf16.msra.mxu1 %v1952_v36 }
 0x13f   : > { %1627 = vmatmul.mubr.f32.vlgmr.msra.gmra.mrb[2].mxu1 %v894_v1 }
 0x208   : > { %v1584_v12 = vpop.f32.mrb[2].mxu0 }
 0x209   : > { %v991_v13 = vpop.f32.mrb[3].mxu0  ;;  %v1681_v15 = vadd.f32 %v1584_v12, %v1471_v14 }
 0x20a   : > { %v1683_v16 = vadd.f32 %v1471_v14, %v991_v13 }
 0x212   : > { %v1628_v17 = vpop.f32.mrb[2].mxu1 }
 0x213   : > { %v1682_v18 = vadd.f32 %v1681_v15, %v1628_v17  ;;  %v1333_v19 = vpop.f32.mrb[3].mxu1 }
 0x214   : > { %v1684_v20 = vadd.f32 %v1683_v16, %v1333_v19 }
 0x215   : > { %1344 = vst.msk [vmem:[%s266_s16 + $0x8] sm:$0xff] %vm808_vm2, %v1682_v18 }
 0x216   : > { %1343 = vst.msk [vmem:[%s266_s16] sm:$0xff] %vm808_vm2, %v1684_v20 }
 0x217   : > { %1771 = shalt.err (!%p1768_p5)
}
 0x218   : > { %s1772_s12 = scalar_lea.hbm %s1982_s29, 256  ;;  %s1776_s14 = scalar_lea.hbm %s2037_s5, 512 }
 0x219   : > { %p1773_p6 = scmp.ne.s32.totalorder %s1982_s29, %s1772_s12  ;;  %p1777_p10 = scmp.lt.u32.totalorder %s1982_s29, %s2037_s5 }
 0x21a   : > { %p1778_p11 = scmp.lt.u32.totalorder %s1776_s14, %s1772_s12  ;;  %p1780_p13 = scmp.lt.u32.totalorder %s1772_s12, %s1982_s29 }
 0x21b   : > { %p1774_p7 = pnand %p1773_p6, %p1911_p4 }
 0x21c   : > { %p1779_p12 = por %p1778_p11, %p1777_p10 }
 0x21d   : > { %p1775_p9 = pneg %p1774_p7 }
 0x21e   : > { %p1781_p0 = por %p1780_p13, %p1779_p12 }
 0x220   : > { %p1782_p1 = pnand %p1781_p0, %p1775_p9 }
 0x222   : > { %1785 = shalt.err (!%p1782_p1)
}
 0x223   : > { %s1839_s24 = smov 128   ;;  %s1840_s25 = smov 8  }
 0x224   : > { %1701 = dma.vmem_to_hbm [thread:$0]  (%p1911_p4), %s1977_s17, 256, %s1982_s29, %s1986_s21, %s1839_s24, %s1839_s24, %s1840_s25  }
 0x225 PF: > { %p1707_p2 = scmp.ge.s32.totalorder %s1836_s23, 2  ;;  %s1376_s27 = sand.u32 1, %s1816_s18  }
 0x226   : > { %s1377_s8 = scalar_lea.sflag [#allocation3], %s1376_s27 }
 0x227   : > { %p1704_p3 = pnand %p1707_p2, %p1918_p8 }
 0x229   : > { %1811 = dma.done.wait (!%p1704_p3), %s1377_s8, 256  }
 0x22a   : > { %1813 = vsyncadd (!%p1704_p3), %s1377_s8, 4294967040  ;;  %s18_s23 = sadd.s32 1, %s1836_s23   ;;  %s2040_s18 = smov %s1820_s19 }
 0x22b   : > { %p15_p5 = scmp.ge.s32.totalorder %s18_s23, 4   ;;  %s2041_s19 = smov %s1824_s20 }
 0x22c   : > { %s2042_s20 = smov %s1924_s6  ;;  %s2043_s21 = smov %s1832_s22 }
 0x22d   : > { %s2044_s22 = smov %s2046_s26  ;;  %17 = sbr.rel (!%p15_p5) target bundleno = 4 (0x4), region = 81 }
 0x234   :  { %1382 = vsyncpa [#allocation3], 1 }
 0x235   :  { %1384 = vsyncpa [#allocation3 + $0x1], 1 }

</bundles_post_ra>
